<compile_context>
chip_gen: v7x
topology: tpu7x:2x2x1
jax: 0.10.0
libtpu: 0.0.40
codegen_flags: <defaults>
</compile_context>

<pallas_src>
import functools

import numpy as np
import jax
import jax.numpy as jnp
from jax.experimental import pallas as pl
from jax.experimental.pallas import tpu as pltpu

# ----------------------------------------------------------------------------
# db4 (Daubechies-4, filter length 8) filter bank, PyWavelets convention.
# ----------------------------------------------------------------------------
_DB4_DEC_LO = np.array([
    -0.010597401785069032, 0.0328830116668852, 0.030841381835560764,
    -0.18703481171909309, -0.027983769416859854, 0.6308807679298589,
    0.7148465705529157, 0.2303778133088965], dtype=np.float64)
_DB4_DEC_HI = np.array([
    -0.2303778133088965, 0.7148465705529157, -0.6308807679298589,
    -0.027983769416859854, 0.18703481171909309, 0.030841381835560764,
    -0.0328830116668852, -0.010597401785069032], dtype=np.float64)
_DB4_REC_LO = _DB4_DEC_LO[::-1].copy()
_DB4_REC_HI = _DB4_DEC_HI[::-1].copy()


def _dwt_matrix(n_in, filt):
    """Linear operator of one pywt.dwt level (mode='symmetric'): c = M @ x."""
    F = len(filt)
    n_out = (n_in + F - 1) // 2
    M = np.zeros((n_out, n_in), dtype=np.float64)
    eye = np.eye(n_in, dtype=np.float64)
    for c in range(n_in):
        ext = np.pad(eye[:, c], (F - 1, F - 1), mode='symmetric')
        M[:, c] = np.convolve(ext, filt, mode='valid')[1::2]
    return M


def _idwt_matrix(n_coeff, filt):
    """Single-branch pywt.idwt reconstruction (other branch = None): y = M @ c."""
    F = len(filt)
    n_out = 2 * n_coeff - F + 2
    M = np.zeros((n_out, n_coeff), dtype=np.float64)
    eye = np.eye(n_coeff, dtype=np.float64)
    for c in range(n_coeff):
        up = np.zeros(2 * n_coeff - 1, dtype=np.float64)
        up[::2] = eye[:, c]
        M[:, c] = np.convolve(up, filt, mode='full')[F - 2: F - 2 + n_out]
    return M


@functools.lru_cache(maxsize=8)
def build_wavelet_operators(n_signal):
    """Fold WaveletLayer(db4, level=2, low_freq=2) into two (N, N_rec) matrices.

    low  row = idwt(cA2 zero-padded to max coeff len, None)   (rec_lo branch)
    high row = idwt(None, cD1)                                 (rec_hi branch)
    """
    D1_lo = _dwt_matrix(n_signal, _DB4_DEC_LO)          # (n1, N): x -> cA1
    D1_hi = _dwt_matrix(n_signal, _DB4_DEC_HI)          # (n1, N): x -> cD1
    n1 = D1_lo.shape[0]
    D2_lo = _dwt_matrix(n1, _DB4_DEC_LO)                # (n2, n1): cA1 -> cA2
    n2 = D2_lo.shape[0]
    max_len = n1                                        # longest coeff row (cD1)
    P = np.zeros((max_len, n2), dtype=np.float64)       # zero-pad cA2 -> max_len
    P[:n2, :] = np.eye(n2)
    R_lo = _idwt_matrix(max_len, _DB4_REC_LO)           # (n_rec, max_len)
    R_hi = _idwt_matrix(max_len, _DB4_REC_HI)           # (n_rec, max_len)
    M_low = R_lo @ P @ D2_lo @ D1_lo                    # (n_rec, N)
    M_high = R_hi @ D1_hi                               # (n_rec, N)
    # Return transposed so the kernel does (b, N) @ (N, n_rec).
    return (np.ascontiguousarray(M_low.T, dtype=np.float32),
            np.ascontiguousarray(M_high.T, dtype=np.float32))


# ----------------------------------------------------------------------------
# Tiling constants (bf16 weight tile 1024x2048 = 4 MiB; double-buffered total
# ~8.3 MiB VMEM -> comfortably under v7x's 64 MiB per-TC and v5e/v6e defaults).
# ----------------------------------------------------------------------------
_LANE = 128
_SUBLANE = 8
_TK_MAX = 1024      # K-reduction tile
_TN_MAX = 2048      # output-lane tile (lane-dense, unmasked stores)


def _round_up(v, m):
    return ((v + m - 1) // m) * m


@functools.lru_cache(maxsize=8)
def _fused_operator(n_signal, tk_max=_TK_MAX, tn_max=_TN_MAX):
    """Build once per (N, tiling): fused bf16 operator + banded-K metadata.

    Returns (weight bf16 (n_pad, cols_pad), k_start int32 (n_j_tiles,),
    n_rec, n_pad, cols_pad, tk, tn, band_k_tiles).
    """
    m_low_t, m_high_t = build_wavelet_operators(n_signal)
    n_rec = m_low_t.shape[1]
    fused = np.concatenate([m_low_t, m_high_t], axis=1)   # (N, 2*n_rec)
    n_cols = fused.shape[1]

    # K (reduction) tiling.
    tk = min(tk_max, _round_up(n_signal, _LANE))
    n_pad = _round_up(n_signal, tk)
    n_k_tiles = n_pad // tk

    # Output-lane tiling: lane-dense, and >=2 tiles whenever possible so the
    # "parallel" grid axis can shard across both TensorCores (v7x megacore).
    cols_128 = _round_up(n_cols, _LANE)
    tn = min(tn_max, cols_128)
    if cols_128 // tn < 2 and cols_128 >= 2 * _LANE:
        tn = _round_up(cols_128 // 2, _LANE)
    cols_pad = _round_up(cols_128, tn)
    n_j_tiles = cols_pad // tn

    w = np.zeros((n_pad, cols_pad), dtype=np.float32)
    w[:n_signal, :n_cols] = fused

    # Banded K grid: for each output-column tile, find the contiguous window
    # of K tiles that actually carries nonzero weight (exact structural zeros
    # outside the band, so this is both tight and always correct).
    k_lo = np.zeros(n_j_tiles, dtype=np.int64)
    k_hi = np.zeros(n_j_tiles, dtype=np.int64)
    for j in range(n_j_tiles):
        nz = np.flatnonzero(np.any(w[:, j * tn:(j + 1) * tn] != 0.0, axis=1))
        if nz.size:
            k_lo[j] = nz[0] // tk
            k_hi[j] = nz[-1] // tk
    band_k_tiles = int(np.max(k_hi - k_lo + 1))
    # Uniform trip count; clamp so the window stays in range and covers the band.
    k_start = np.minimum(k_lo, n_k_tiles - band_k_tiles).astype(np.int32)

    # bf16 storage: kernel is HBM-bandwidth bound; accumulation stays f32.
    w_dev = jnp.asarray(w).astype(jnp.bfloat16)
    k_start_dev = jnp.asarray(k_start, dtype=jnp.int32)
    return w_dev, k_start_dev, n_rec, n_pad, cols_pad, tk, tn, band_k_tiles


# ----------------------------------------------------------------------------
# Pallas kernel: banded (b_pad, N_pad) @ (N_pad, cols_pad) GEMM.
# Grid = (output tiles [parallel], banded K tiles [arbitrary / reduction]);
# the output tile is VMEM-resident across K and accumulated in-place (f32).
# ----------------------------------------------------------------------------
def _wavelet_matmul_kernel(k_start_ref, x_ref, w_ref, o_ref):
    del k_start_ref  # consumed by the index_maps only
    k = pl.program_id(1)

    @pl.when(k == 0)
    def _():
        o_ref[...] = jnp.zeros_like(o_ref)

    o_ref[...] += jnp.dot(x_ref[...], w_ref[...],
                          preferred_element_type=jnp.float32)


def wavelet_layer_forward(x, level=2, low_freq=2,
                          tk_max=_TK_MAX, tn_max=_TN_MAX):
    """JAX/Pallas equivalent of WaveletLayer(pred_len, low_freq=2, level=2)(x)."""
    assert level == 2 and low_freq == 2, "only module defaults supported"
    b, t, d = x.shape
    n = t * d
    (w, k_start, n_rec, n_pad, cols_pad,
     tk, tn, band_k_tiles) = _fused_operator(n, tk_max, tn_max)

    b_pad = _round_up(max(b, _SUBLANE), _SUBLANE)
    x_flat = x.reshape(b, n).astype(jnp.bfloat16)
    x_padded = jnp.pad(x_flat, ((0, b_pad - b), (0, n_pad - n)))

    n_j_tiles = cols_pad // tn
    grid = (n_j_tiles, band_k_tiles)

    out = pl.pallas_call(
        _wavelet_matmul_kernel,
        out_shape=jax.ShapeDtypeStruct((b_pad, cols_pad), jnp.float32),
        grid_spec=pltpu.PrefetchScalarGridSpec(
            num_scalar_prefetch=1,
            grid=grid,
            in_specs=[
                # x tile follows the banded K window of output tile j.
                pl.BlockSpec((b_pad, tk), lambda j, k, ks: (0, ks[j] + k)),
                # Only the banded weight K-tiles are streamed from HBM.
                pl.BlockSpec((tk, tn), lambda j, k, ks: (ks[j] + k, j)),
            ],
            out_specs=pl.BlockSpec((b_pad, tn), lambda j, k, ks: (0, j)),
        ),
        compiler_params=pltpu.CompilerParams(
            dimension_semantics=("parallel", "arbitrary"),
            vmem_limit_bytes=48 * 1024 * 1024,   # <= v7x per-TC VMEM headroom
        ),
    )(k_start, x_padded, w)

    low = out[:b, :n_rec].reshape(b, 1, n_rec)
    high = out[:b, n_rec:2 * n_rec].reshape(b, 1, n_rec)
    return low, high


# ----------------------------------------------------------------------------
# Self-check: compare against a numpy application of the same folded operators
# with the operands rounded to bf16 exactly as the kernel does (accum in f32).
# ----------------------------------------------------------------------------
def _bf16_roundtrip(a):
    return np.asarray(
        jnp.asarray(np.asarray(a, np.float32)).astype(jnp.bfloat16)
        .astype(jnp.float32))


def _check(b, t, d, key, **kw):
    x = jax.random.normal(key, (b, t, d), dtype=jnp.float32)
    low, high = wavelet_layer_forward(x, **kw)
    jax.block_until_ready((low, high))

    m_low_t, m_high_t = build_wavelet_operators(t * d)
    x_np = _bf16_roundtrip(np.asarray(x).reshape(b, t * d))
    ref_low = (x_np @ _bf16_roundtrip(m_low_t)).reshape(b, 1, -1)
    ref_high = (x_np @ _bf16_roundtrip(m_high_t)).reshape(b, 1, -1)
    assert low.shape == ref_low.shape and high.shape == ref_high.shape
    np.testing.assert_allclose(np.asarray(low), ref_low, rtol=1e-4, atol=1e-4)
    np.testing.assert_allclose(np.asarray(high), ref_high, rtol=1e-4, atol=1e-4)


if __name__ == "__main__":
    key = jax.random.PRNGKey(0)
    k1, k2, k3 = jax.random.split(key, 3)

    # Small default-style case: N = t*d = 64 (single-tile grid).
    _check(b=2, t=16, d=4, key=k1)

    # Larger case: N = 2048 -> 2 parallel output tiles (both TCs get work on
    # v7x) and a multi-step K reduction accumulating directly into o_ref.
    _check(b=2, t=256, d=8, key=k2)

    # Same signal length with small tile overrides to exercise the banded,
    # scalar-prefetch-driven K grid (per-output-tile k_start differs).
    _check(b=2, t=256, d=8, key=k3, tk_max=256, tn_max=256)

    print("KERNEL_OK")
</pallas_src>

<mosaic_0001>
module attributes {stable_mosaic.version = 11 : i64} {
  func.func @_wavelet_matmul_kernel(%arg0: i32, %arg1: i32, %arg2: memref<1xi32, #tpu.memory_space<smem>>, %arg3: memref<8x128xbf16, #tpu.memory_space<vmem>>, %arg4: memref<128x128xbf16, #tpu.memory_space<vmem>>, %arg5: memref<8x128xf32, #tpu.memory_space<vmem>>) attributes {dimension_semantics = [#tpu.dimension_semantics<parallel>, #tpu.dimension_semantics<arbitrary>], iteration_bounds = array<i64: 1, 1>, scalar_prefetch = 1 : i64, scratch_operands = 0 : i64, tpu.core_type = #tpu.core_type<tc>, window_params = [{transform_indices = @transform_0, window_bounds = array<i64: 8, 128>}, {transform_indices = @transform_1, window_bounds = array<i64: 128, 128>}, {transform_indices = @transform_2, window_bounds = array<i64: 8, 128>}]} {
    %c0_i32 = arith.constant 0 : i32
    %0 = arith.cmpi eq, %arg1, %c0_i32 : i32
    %1 = arith.extui %0 : i1 to i32
    %c0_i32_0 = arith.constant 0 : i32
    %2 = arith.cmpi ne, %1, %c0_i32_0 : i32
    scf.if %2 {
      %cst_8 = arith.constant 0.000000e+00 : f32
      %9 = vector.broadcast %cst_8 : f32 to vector<8x128xf32>
      %c0_9 = arith.constant 0 : index
      %c0_10 = arith.constant 0 : index
      %10 = vector.load %arg5[%c0_9, %c0_10] : memref<8x128xf32, #tpu.memory_space<vmem>>, vector<8x128xf32>
      tpu.vector_store %arg5[%c0_9, %c0_10], %9 {strides = array<i32>} : memref<8x128xf32, #tpu.memory_space<vmem>>, vector<8x128xf32>,
    } else {
    }
    %c0 = arith.constant 0 : index
    %c0_1 = arith.constant 0 : index
    %3 = vector.load %arg5[%c0, %c0_1] : memref<8x128xf32, #tpu.memory_space<vmem>>, vector<8x128xf32>
    %c0_2 = arith.constant 0 : index
    %c0_3 = arith.constant 0 : index
    %4 = vector.load %arg3[%c0_2, %c0_3] : memref<8x128xbf16, #tpu.memory_space<vmem>>, vector<8x128xbf16>
    %c0_4 = arith.constant 0 : index
    %c0_5 = arith.constant 0 : index
    %5 = vector.load %arg4[%c0_4, %c0_5] : memref<128x128xbf16, #tpu.memory_space<vmem>>, vector<128x128xbf16>
    %cst = arith.constant dense<0.000000e+00> : vector<8x128xf32>
    %6 = tpu.matmul %4, %5, %cst {dimension_numbers = #tpu.dot_dimension_numbers<[1], [0], [0], [1], [0, 0, 1, 1], [], []>} : vector<8x128xbf16>, vector<128x128xbf16>, vector<8x128xf32> -> vector<8x128xf32>
    %7 = arith.addf %3, %6 : vector<8x128xf32>
    %c0_6 = arith.constant 0 : index
    %c0_7 = arith.constant 0 : index
    %8 = vector.load %arg5[%c0_6, %c0_7] : memref<8x128xf32, #tpu.memory_space<vmem>>, vector<8x128xf32>
    tpu.vector_store %arg5[%c0_6, %c0_7], %7 {strides = array<i32>} : memref<8x128xf32, #tpu.memory_space<vmem>>, vector<8x128xf32>,
    return
  }
  func.func @transform_0(%arg0: i32, %arg1: i32, %arg2: memref<1xi32, #tpu.memory_space<smem>>) -> (i32, i32) {
    %0 = arith.index_cast %arg0 : i32 to index
    %1 = memref.load %arg2[%0] : memref<1xi32, #tpu.memory_space<smem>>
    %2 = arith.addi %1, %arg1 : i32
    %c0_i32 = arith.constant 0 : i32
    %c0_i32_0 = arith.constant 0 : i32
    return %c0_i32, %2 : i32, i32
  }
  func.func @transform_1(%arg0: i32, %arg1: i32, %arg2: memref<1xi32, #tpu.memory_space<smem>>) -> (i32, i32) {
    %0 = arith.index_cast %arg0 : i32 to index
    %1 = memref.load %arg2[%0] : memref<1xi32, #tpu.memory_space<smem>>
    %2 = arith.addi %1, %arg1 : i32
    %c0_i32 = arith.constant 0 : i32
    return %2, %arg0 : i32, i32
  }
  func.func @transform_2(%arg0: i32, %arg1: i32, %arg2: memref<1xi32, #tpu.memory_space<smem>>) -> (i32, i32) {
    %c0_i32 = arith.constant 0 : i32
    %c0_i32_0 = arith.constant 0 : i32
    return %c0_i32, %arg0 : i32, i32
  }
}

</mosaic_0001>

<bundles_post_ra>
// kernel: tpu_custom_call.1
= control target key start
LH: loop header
LB: loop body
LE: loop exit
PB: predicated region body
PF: predicated region fallthrough
CT: control target
= control target key end

     0   :  { %9 = vsyncpa [#allocation5], 0  ;;  %s383_s0 = inlined_call_operand.<no memory space> [shape: s32[1], index: 0, kind: input, shape index: {}]   ;;  %s384_s1 = inlined_call_operand.hbm [shape: bf16[8,128], index: 1, kind: input, shape index: {}]   ;;  %s385_s2 = inlined_call_operand.hbm [shape: bf16[128,128], index: 2, kind: input, shape index: {}]   ;;  %s386_s3 = inlined_call_operand.hbm [shape: f32[8,128], index: 3, kind: output, shape index: {}]  }
   0x1   :  { %10 = vsyncpa [#allocation8], 0 }
   0x2   :  { %11 = vsyncpa [#allocation6], 0  ;;  %s188_s14 = sshll.u32 %s383_s0, 6  ;;  %s320_s18 = smov [#allocation4]  }
   0x3   :  { %s20_s17 = scalar_lea.hbm %s384_s1, %s188_s14  ;;  %s22_s19 = sshll.u32 %s320_s18, 4  ;;  %s23_s19 = int_to_ptr.vmem [resolvable:$true] %s22_s19 }
   0x4   :  { %s199_s22 = sshll.u32 %s383_s0, 10  ;;  %s244_s23 = scalar_lea.hbm %s20_s17, 64 }
   0x5   :  { %p245_p0 = scmp.ne.s32.totalorder %s20_s17, %s244_s23  ;;  %s246_s26 = scalar_lea.hbm %s384_s1, 64 }
   0x6   :  { %p247_p1 = scmp.lt.u32.totalorder %s20_s17, %s384_s1  ;;  %p248_p2 = scmp.lt.u32.totalorder %s246_s26, %s244_s23 }
   0x7   :  { %p250_p4 = scmp.lt.u32.totalorder %s244_s23, %s20_s17 }
   0x8   :  { %p249_p3 = por %p248_p2, %p247_p1 }
   0xa   :  { %p251_p5 = por %p250_p4, %p249_p3 }
   0xc   :  { %p252_p6 = pnand %p251_p5, %p245_p0 }
   0xe   :  { %255 = shalt.err (!%p252_p6)
}
   0xf   :  { %s256_s29 = scalar_lea.vmem %s23_s19, 64  ;;  %p261_p8 = scmp.lt.s32.totalorder %s23_s19, %s23_s19 }
  0x10   :  { %p257_p7 = scmp.ne.s32.totalorder %s23_s19, %s256_s29  ;;  %p262_p9 = scmp.lt.s32.totalorder %s256_s29, %s256_s29 }
  0x12   :  { %p263_p10 = por %p262_p9, %p261_p8 }
  0x14   :  { %p264_p11 = pnand %p263_p10, %p257_p7 }
  0x16   :  { %267 = shalt.err (!%p264_p11)
}
  0x17   :  { %25 = dma.hbm_to_vmem [thread:$0]  %s20_s17, 64, %s23_s19, [#allocation5]  }
  0x18   :  { %s35_s4 = scalar_lea.hbm %s385_s2, %s199_s22  ;;  %s321_s5 = smov [#allocation7]  }
  0x19   :  { %s36_s1 = sshll.u32 %s321_s5, 4  ;;  %s268_s6 = scalar_lea.hbm %s35_s4, 1024  ;;  %s37_s1 = int_to_ptr.vmem [resolvable:$true] %s36_s1 }
  0x1a   :  { %p269_p12 = scmp.ne.s32.totalorder %s35_s4, %s268_s6  ;;  %s270_s9 = scalar_lea.hbm %s385_s2, 1024 }
  0x1b   :  { %p271_p13 = scmp.lt.u32.totalorder %s35_s4, %s385_s2  ;;  %p272_p0 = scmp.lt.u32.totalorder %s270_s9, %s268_s6 }
  0x1c   :  { %p274_p2 = scmp.lt.u32.totalorder %s268_s6, %s35_s4 }
  0x1d   :  { %p273_p1 = por %p272_p0, %p271_p13 }
  0x1f   :  { %p275_p3 = por %p274_p2, %p273_p1 }
  0x21   :  { %p276_p4 = pnand %p275_p3, %p269_p12 }
  0x23   :  { %279 = shalt.err (!%p276_p4)
}
  0x24   :  { %s280_s12 = scalar_lea.vmem %s37_s1, 1024  ;;  %p285_p6 = scmp.lt.s32.totalorder %s37_s1, %s37_s1 }
  0x25   :  { %p281_p5 = scmp.ne.s32.totalorder %s37_s1, %s280_s12  ;;  %p286_p7 = scmp.lt.s32.totalorder %s280_s12, %s280_s12 }
  0x27   :  { %p287_p8 = por %p286_p7, %p285_p6 }
  0x29   :  { %p288_p9 = pnand %p287_p8, %p281_p5 }
  0x2b   :  { %291 = shalt.err (!%p288_p9)
}
  0x2c   :  { %s322_s13 = smov 64   ;;  %s323_s14 = smov 4  }
  0x2d   :  { %42 = dma.hbm_to_vmem [thread:$0]  %s35_s4, 1024, %s37_s1, [#allocation8], %s322_s13, %s322_s13, %s323_s14  }
  0x2e   :  { %314 = dma.done.wait [#allocation5], 64  }
  0x2f   :  { %315 = vsyncadd [#allocation5], 4294967232 }
  0x30   :  { %316 = dma.done.wait [#allocation8], 1024  }
  0x31   :  { %317 = vsyncadd [#allocation8], 4294966272  ;;  %v324_v0 = vmov 0.0   ;;  %vm325_vm0 = vmmov 0   ;;  %v236_v1 = vld [vmem:[#allocation7] sm:$0xff]   ;;  %v237_v2 = vld [vmem:[#allocation7 + $0x8] sm:$0xff]  }
  0x32   :  { %209 = vmatprep.subr.bf16.mxu0 %v324_v0  ;;  %225 = vmatprep.mubr.msk.bf16.mxu0 %vm325_vm0, %v324_v0  ;;  %v238_v3 = vld [vmem:[#allocation7 + $0x10] sm:$0xff]   ;;  %v239_v4 = vld [vmem:[#allocation7 + $0x18] sm:$0xff]   ;;  %v240_v5 = vld [vmem:[#allocation7 + $0x20] sm:$0xff]   ;;  %s326_s2 = smov [#allocation9]  }
  0x33   :  { %210 = vmatpush3.bf16.msra.mxu0 %v236_v1  ;;  %v241_v6 = vld [vmem:[#allocation7 + $0x28] sm:$0xff]   ;;  %v242_v7 = vld [vmem:[#allocation7 + $0x30] sm:$0xff]   ;;  %v243_v8 = vld [vmem:[#allocation7 + $0x38] sm:$0xff]   ;;  %s174_s15 = sshll.u32 %s326_s2, 4  ;;  %s175_s15 = int_to_ptr.vmem [resolvable:$true] %s174_s15 }
  0x34   :  { %211 = vmatprep.subr.bf16.mxu0 %v324_v0  ;;  %v61_v9 = vld [vmem:[#allocation4] sm:$0xf]  ;;  %s292_s16 = scalar_lea.vmem %s175_s15, 128  ;;  %p297_p11 = scmp.lt.s32.totalorder %s175_s15, %s175_s15 }
  0x35   :  { %p293_p10 = scmp.ne.s32.totalorder %s175_s15, %s292_s16  ;;  %p298_p12 = scmp.lt.s32.totalorder %s292_s16, %s292_s16 }
  0x37   :  { %212 = vmatpush3.bf16.msra.mxu0 %v237_v2  ;;  %p299_p13 = por %p298_p12, %p297_p11 }
  0x38   :  { %213 = vmatprep.subr.bf16.mxu0 %v324_v0 }
  0x39   :  { %p300_p0 = pnand %p299_p13, %p293_p10 }
  0x3b   :  { %214 = vmatpush3.bf16.msra.mxu0 %v238_v3 }
  0x3c   :  { %215 = vmatprep.subr.bf16.mxu0 %v324_v0 }
  0x3f   :  { %216 = vmatpush3.bf16.msra.mxu0 %v239_v4 }
  0x40   :  { %217 = vmatprep.subr.bf16.mxu0 %v324_v0 }
  0x43   :  { %218 = vmatpush3.bf16.msra.mxu0 %v240_v5 }
  0x44   :  { %219 = vmatprep.subr.bf16.mxu0 %v324_v0 }
  0x47   :  { %220 = vmatpush3.bf16.msra.mxu0 %v241_v6 }
  0x48   :  { %221 = vmatprep.subr.bf16.mxu0 %v324_v0 }
  0x4b   :  { %222 = vmatpush3.bf16.msra.mxu0 %v242_v7 }
  0x4c   :  { %223 = vmatprep.subr.bf16.mxu0 %v324_v0 }
  0x4f   :  { %224 = vmatpush3.bf16.msra.mxu0 %v243_v8 }
  0x52   :  { %226 = vmatmul.mubr.bf16.vlgmr.msra.gmra.mrb[0].mxu0 %v61_v9 }
 0x125   :  { %v160_v10 = vpop.f32.mrb[0].mxu0 }
 0x126   :  { %v227_v11 = vpop.f32.mrb[1].mxu0  ;;  %167 = vst [vmem:[#allocation9] sm:$0xff] %v160_v10 }
 0x127   :  { %v163_v12 = vpop.f32.mrb[2].mxu0 }
 0x128   :  { %v228_v13 = vpop.f32.mrb[3].mxu0 }
 0x129   :  { %303 = shalt.err (!%p300_p0)
}
 0x12a   :  { %s304_s19 = scalar_lea.hbm %s386_s3, 128 }
 0x12b   :  { %p305_p1 = scmp.ne.s32.totalorder %s386_s3, %s304_s19  ;;  %p308_p2 = scmp.lt.u32.totalorder %s304_s19, %s386_s3 }
 0x12d   :  { %p310_p3 = pnand %p308_p2, %p305_p1 }
 0x12f   :  { %313 = shalt.err (!%p310_p3)
}
 0x130   :  { %177 = dma.vmem_to_hbm [thread:$0]  %s175_s15, 128, %s386_s3, [#allocation6]  }
 0x131   :  { %318 = dma.done.wait [#allocation6], 128  }
 0x132   :  { %319 = vsyncadd [#allocation6], 4294967168 }
 0x133   :  { %181 = vsyncpa [#allocation5], 1 }
 0x134   :  { %182 = vsyncpa [#allocation8], 1 }
 0x135   :  { %183 = vsyncpa [#allocation6], 1 }

</bundles_post_ra>
